<compile_context>
chip_gen: v7x
topology: tpu7x:2x2x1
jax: 0.10.0
libtpu: 0.0.40
codegen_flags: <defaults>
</compile_context>

<pallas_src>
import jax
import jax.numpy as jnp
from jax.experimental import pallas as pl
from jax.experimental.pallas import tpu as pltpu


# ---------------------------------------------------------------------------
# Per-generation sizing
# ---------------------------------------------------------------------------
def _hw_defaults():
    """Returns (block bytes measured in f32, scoped-VMEM limit or None)."""
    try:
        kind = jax.devices()[0].device_kind.lower()
    except Exception:
        kind = ""
    if ("v6" in kind) or ("v7" in kind) or ("7x" in kind):
        # 4 MiB blocks; raise scoped VMEM so double-buffered in+out (16 MiB)
        # plus elementwise temporaries fit with headroom (v7x physical 64 MiB).
        return 4 << 20, 48 * 1024 * 1024
    if ("v2" in kind) or ("v3" in kind):
        return 1 << 20, None
    # v5e / v5p / v4 / unknown: 2 MiB blocks fit the 16 MiB scoped default.
    return 2 << 20, None


_BLOCK_BYTES, _VMEM_LIMIT = _hw_defaults()
_LANE_CHOICES = (1024, 512, 256, 128)   # lane-dense widths (multiples of 128)


def _compiler_params(dims):
    if _VMEM_LIMIT is None:
        return pltpu.CompilerParams(dimension_semantics=dims)
    return pltpu.CompilerParams(dimension_semantics=dims,
                                vmem_limit_bytes=_VMEM_LIMIT)


def _plan(n):
    """Choose (lane width W, rows, block rows BR, pad elements) for flat size n."""
    pad = 0
    for W in _LANE_CHOICES:
        if n % W == 0:
            break
    else:
        # TODO(synk): flat sizes not divisible by 128 still pay one pad+slice
        # HBM round-trip (rare for NN activations); zero padding is the
        # identity for the relu-max and is sliced off the output.
        W = _LANE_CHOICES[0]
        pad = (-n) % W
    rows = (n + pad) // W
    # Block rows sized against f32 working bytes; multiple of 8 sublanes.
    br = max(8, (_BLOCK_BYTES // (W * 4)) // 8 * 8)
    return W, rows, br, pad


# ---------------------------------------------------------------------------
# Kernels
# ---------------------------------------------------------------------------
def _make_relu_max_ema_kernel(blk_rows, W, rows, momentum):
    """Grid kernel: running-max EMA over relu(x) with an (8, W) accumulator."""
    ragged = (rows % blk_rows) != 0
    fold = (blk_rows % 8 == 0) and (blk_rows > 8)

    def kernel(rm_ref, x_ref, rm_out_ref, acc_ref):
        i = pl.program_id(0)

        @pl.when(i == 0)
        def _init():
            # relu(x) >= 0, so 0 is the identity for the running max.
            acc_ref[...] = jnp.zeros_like(acc_ref)

        v = jnp.maximum(x_ref[...].astype(jnp.float32), 0.0)
        if ragged:
            # Mask rows of the (partial) last block that lie past the array.
            rid = i * blk_rows + jax.lax.broadcasted_iota(
                jnp.int32, (blk_rows, W), 0)
            v = jnp.where(rid < rows, v, 0.0)
        if fold:
            # Fold the block sublane-tile-wise into an (8, W) slab: pure VALU.
            v = jnp.max(v.reshape(blk_rows // 8, 8, W), axis=0)
        acc_ref[...] = jnp.maximum(acc_ref[...], v)

        @pl.when(i == pl.num_programs(0) - 1)
        def _finish():
            # Single cross-lane reduce at the end; EMA done as (1,1) vector
            # math (scalar-splat ops) to stay on proven lowering paths.
            m = jnp.zeros((1, 1), jnp.float32) + jnp.max(acc_ref[...])
            rm_old = jnp.zeros((1, 1), jnp.float32) + rm_ref[0]
            rm_out_ref[...] = (1.0 - momentum) * rm_old + momentum * m

    return kernel, fold


def _scale_clamp_kernel(vth_ref, x_ref, o_ref):
    """o = clamp(relu(x) / v_th, 0, 1); v_th > 0 so the lower clamp is implied."""
    v_th = vth_ref[0]                                  # f32 scalar from SMEM
    r = jnp.maximum(x_ref[...].astype(jnp.float32), 0.0)
    o_ref[...] = jnp.minimum(r / v_th, 1.0).astype(o_ref.dtype)


def _make_fused_train_kernel(momentum, eps):
    """Single VMEM-resident block: relu-max + EMA + v_th + normalized output."""

    def kernel(rm_ref, scale_ref, x_ref, y_ref, rm_out_ref):
        r = jnp.maximum(x_ref[...].astype(jnp.float32), 0.0)
        m = jnp.zeros((1, 1), jnp.float32) + jnp.max(r)
        rm_old = jnp.zeros((1, 1), jnp.float32) + rm_ref[0]
        sc = jnp.zeros((1, 1), jnp.float32) + scale_ref[0]
        rm_new = (1.0 - momentum) * rm_old + momentum * m
        v_th = rm_new * sc + eps                        # > 0 by construction
        y_ref[...] = jnp.minimum(r / v_th, 1.0).astype(y_ref.dtype)
        rm_out_ref[...] = rm_new

    return kernel


# ---------------------------------------------------------------------------
# pallas_call wrappers
# ---------------------------------------------------------------------------
def _smem_scalar_spec():
    return pl.BlockSpec((1,), lambda i: (0,), memory_space=pltpu.SMEM)


def relu_max_ema_pallas(x2d, running_max, momentum, blk_rows):
    """Two-pass training path, pass 1: returns updated running_max (1,) f32."""
    R, W = x2d.shape
    nblk = pl.cdiv(R, blk_rows)
    kernel, fold = _make_relu_max_ema_kernel(blk_rows, W, R, momentum)
    acc_shape = (8, W) if fold else (blk_rows, W)
    rm_new = pl.pallas_call(
        kernel,
        out_shape=jax.ShapeDtypeStruct((1, 1), jnp.float32),
        grid=(nblk,),
        in_specs=[_smem_scalar_spec(),
                  pl.BlockSpec((blk_rows, W), lambda i: (i, 0))],
        out_specs=pl.BlockSpec((1, 1), lambda i: (0, 0)),
        scratch_shapes=[pltpu.VMEM(acc_shape, jnp.float32)],
        compiler_params=_compiler_params(("arbitrary",)),
    )(running_max, x2d)
    return rm_new.reshape(1)


def scale_clamp_pallas(x2d, v_th, blk_rows):
    """Elementwise hot path (eval and pass 2 of training)."""
    R, W = x2d.shape
    nblk = pl.cdiv(R, blk_rows)
    return pl.pallas_call(
        _scale_clamp_kernel,
        out_shape=jax.ShapeDtypeStruct((R, W), x2d.dtype),
        grid=(nblk,),
        in_specs=[_smem_scalar_spec(),
                  pl.BlockSpec((blk_rows, W), lambda i: (i, 0))],
        out_specs=pl.BlockSpec((blk_rows, W), lambda i: (i, 0)),
        compiler_params=_compiler_params(("parallel",)),
    )(v_th, x2d)


def fused_train_pallas(x2d, running_max, scale_sig, momentum, eps):
    """Fused 1R+1W training pass; returns (y2d, new running_max (1,))."""
    R, W = x2d.shape
    y2d, rm_new = pl.pallas_call(
        _make_fused_train_kernel(momentum, eps),
        out_shape=(jax.ShapeDtypeStruct((R, W), x2d.dtype),
                   jax.ShapeDtypeStruct((1, 1), jnp.float32)),
        grid=(1,),
        in_specs=[_smem_scalar_spec(), _smem_scalar_spec(),
                  pl.BlockSpec((R, W), lambda i: (0, 0))],
        out_specs=(pl.BlockSpec((R, W), lambda i: (0, 0)),
                   pl.BlockSpec((1, 1), lambda i: (0, 0))),
        compiler_params=_compiler_params(("arbitrary",)),
    )(running_max, scale_sig, x2d)
    return y2d, rm_new.reshape(1)


# ---------------------------------------------------------------------------
# Module
# ---------------------------------------------------------------------------
class SpikingNorm:
    def __init__(self, momentum=0.1, scale=True, sigmoid=True, eps=1e-6):
        self.sigmoid = sigmoid
        self.eps = eps
        self.lock_max = False
        self.momentum = momentum
        # torch init: scale starts at 1.0, multiplied by 10 when sigmoid=True.
        init = 10.0 if sigmoid else 1.0
        self.scale = jnp.array([init], dtype=jnp.float32)       # parameter / buffer
        self.running_max = jnp.ones((1,), dtype=jnp.float32)    # buffer
        self.training = True

    def calc_scale(self):
        s = jax.nn.sigmoid(self.scale) if self.sigmoid else jnp.abs(self.scale)
        return s.astype(jnp.float32)

    def calc_v_th(self):
        return (self.running_max * self.calc_scale() + self.eps).astype(jnp.float32)

    def __call__(self, x):
        # NOTE: wrap the calling model in jax.jit so the tiny scalar glue and
        # the pallas_calls fuse into a single dispatch.
        orig_shape = x.shape
        n = int(x.size)
        W, rows, br, pad = _plan(n)
        flat = x.reshape(-1)
        if pad:
            flat = jnp.pad(flat, (0, pad))   # zeros: relu-max identity
        x2d = flat.reshape(rows, W)
        blk = rows if rows <= br else br

        update = self.training and (not self.lock_max)
        if update and rows <= br:
            # Whole tensor fits in one block -> fused 1R+1W training pass.
            y2d, rm_new = fused_train_pallas(
                x2d, self.running_max, self.calc_scale(), self.momentum, self.eps)
            self.running_max = rm_new
        else:
            if update:
                # TODO(synk): torch uses .item() (host sync); kept as a device scalar.
                self.running_max = relu_max_ema_pallas(
                    x2d, self.running_max, self.momentum, blk)
            y2d = scale_clamp_pallas(x2d, self.calc_v_th(), blk)

        y = y2d.reshape(-1)
        if pad:
            y = y[:n]
        return y.reshape(orig_shape)

    # auxiliary buffer utilities from the torch module (plain JAX, no kernel)
    def extract_running_max(self):
        x = self.running_max
        self.running_max = self.running_max / x
        return x

    def extract_scale(self):
        x = self.scale
        self.running_max = self.running_max * x
        self.scale = jnp.array([1.0], dtype=jnp.float32)
        return x


# ---------------------------------------------------------------------------
# Demo / self-check
# ---------------------------------------------------------------------------
if __name__ == "__main__":
    key = jax.random.PRNGKey(0)
    k1, k2 = jax.random.split(key)

    # --- small module-level test (fused training path) ---------------------
    x = jax.random.normal(k1, (2, 4, 16, 16), dtype=jnp.float32) * 2.0   # NCHW
    mod = SpikingNorm(momentum=0.1, scale=True, sigmoid=True, eps=1e-6)
    y = jax.block_until_ready(mod(x))

    relu_x = jnp.maximum(x, 0.0)
    rmax_ref = (1.0 - 0.1) * jnp.ones((1,)) + 0.1 * jnp.max(relu_x)
    v_th_ref = rmax_ref * jax.nn.sigmoid(jnp.array([10.0])) + 1e-6
    y_ref = jnp.clip(relu_x / v_th_ref, 0.0, 1.0)

    assert y.shape == x.shape and y.dtype == x.dtype
    assert jnp.allclose(y, y_ref, atol=1e-5, rtol=1e-5)
    assert jnp.allclose(mod.running_max, rmax_ref, atol=1e-6)

    # --- eval path (scale_clamp only, no running_max update) ---------------
    mod.training = False
    y_eval = jax.block_until_ready(mod(x))
    assert jnp.allclose(y_eval, y_ref, atol=1e-5, rtol=1e-5)
    assert jnp.allclose(mod.running_max, rmax_ref, atol=1e-6)

    # --- blocked two-pass kernels (grid > 1, ragged last block, (8,W) acc) -
    xb = jax.random.normal(k2, (40, 1024), dtype=jnp.float32) * 3.0
    rm0 = jnp.array([0.5], dtype=jnp.float32)
    rm_new = relu_max_ema_pallas(xb, rm0, 0.1, blk_rows=16)
    rm_ref2 = (1.0 - 0.1) * rm0 + 0.1 * jnp.max(jnp.maximum(xb, 0.0))
    assert jnp.allclose(rm_new, rm_ref2, atol=1e-6)

    v_th2 = (rm_new * jax.nn.sigmoid(jnp.array([10.0])) + 1e-6).astype(jnp.float32)
    yb = jax.block_until_ready(scale_clamp_pallas(xb, v_th2, blk_rows=16))
    yb_ref = jnp.clip(jnp.maximum(xb, 0.0) / v_th2, 0.0, 1.0)
    assert jnp.allclose(yb, yb_ref, atol=1e-5, rtol=1e-5)

    print("KERNEL_OK")
</pallas_src>

<mosaic_0001>
module attributes {stable_mosaic.version = 11 : i64} {
  func.func @kernel(%arg0: i32, %arg1: memref<1xf32, #tpu.memory_space<smem>>, %arg2: memref<1xf32, #tpu.memory_space<smem>>, %arg3: memref<2x1024xf32, #tpu.memory_space<vmem>>, %arg4: memref<2x1024xf32, #tpu.memory_space<vmem>>, %arg5: memref<1x1xf32, #tpu.memory_space<vmem>>) attributes {dimension_semantics = [#tpu.dimension_semantics<arbitrary>], iteration_bounds = array<i64: 1>, scalar_prefetch = 0 : i64, scratch_operands = 0 : i64, tpu.core_type = #tpu.core_type<tc>, window_params = [{transform_indices = @transform_0, window_bounds = array<i64: 1>}, {transform_indices = @transform_1, window_bounds = array<i64: 1>}, {pipeline_mode = #tpu.pipeline_mode<synchronous>, transform_indices = @transform_2, window_bounds = array<i64: 2, 1024>}, {pipeline_mode = #tpu.pipeline_mode<synchronous>, transform_indices = @transform_3, window_bounds = array<i64: 2, 1024>}, {pipeline_mode = #tpu.pipeline_mode<synchronous>, transform_indices = @transform_4, window_bounds = array<i64: 1, 1>}]} {
    %c0 = arith.constant 0 : index
    %c0_0 = arith.constant 0 : index
    %0 = vector.load %arg3[%c0, %c0_0] : memref<2x1024xf32, #tpu.memory_space<vmem>>, vector<2x1024xf32>
    %cst = arith.constant 0.000000e+00 : f32
    %1 = vector.broadcast %cst : f32 to vector<2x1024xf32>
    %2 = arith.maximumf %0, %1 : vector<2x1024xf32>
    %cst_1 = arith.constant 0.000000e+00 : f32
    %3 = vector.broadcast %cst_1 : f32 to vector<1x1xf32>
    %4 = vector.shape_cast %2 : vector<2x1024xf32> to vector<1x2x1024xf32>
    %cst_2 = arith.constant dense<0xFF800000> : vector<1xf32>
    %5 = vector.multi_reduction <maximumf>, %4, %cst_2 [1, 2] : vector<1x2x1024xf32> to vector<1xf32>
    %6 = vector.shape_cast %5 : vector<1xf32> to vector<1x1x1xf32>
    %7 = vector.extract %6[0, 0, 0] : f32 from vector<1x1x1xf32>
    %8 = vector.broadcast %7 : f32 to vector<1x1xf32>
    %9 = arith.addf %3, %8 : vector<1x1xf32>
    %cst_3 = arith.constant 0.000000e+00 : f32
    %10 = vector.broadcast %cst_3 : f32 to vector<1x1xf32>
    %c0_4 = arith.constant 0 : index
    %11 = memref.load %arg1[%c0_4] : memref<1xf32, #tpu.memory_space<smem>>
    %12 = vector.broadcast %11 : f32 to vector<1x1xf32>
    %13 = arith.addf %10, %12 : vector<1x1xf32>
    %cst_5 = arith.constant 0.000000e+00 : f32
    %14 = vector.broadcast %cst_5 : f32 to vector<1x1xf32>
    %c0_6 = arith.constant 0 : index
    %15 = memref.load %arg2[%c0_6] : memref<1xf32, #tpu.memory_space<smem>>
    %16 = vector.broadcast %15 : f32 to vector<1x1xf32>
    %17 = arith.addf %14, %16 : vector<1x1xf32>
    %cst_7 = arith.constant 0.899999976 : f32
    %18 = vector.broadcast %cst_7 : f32 to vector<1x1xf32>
    %19 = arith.mulf %18, %13 : vector<1x1xf32>
    %cst_8 = arith.constant 1.000000e-01 : f32
    %20 = vector.broadcast %cst_8 : f32 to vector<1x1xf32>
    %21 = arith.mulf %20, %9 : vector<1x1xf32>
    %22 = arith.addf %19, %21 : vector<1x1xf32>
    %23 = arith.mulf %22, %17 : vector<1x1xf32>
    %cst_9 = arith.constant 9.99999997E-7 : f32
    %24 = vector.broadcast %cst_9 : f32 to vector<1x1xf32>
    %25 = arith.addf %23, %24 : vector<1x1xf32>
    %26 = vector.broadcast %25 : vector<1x1xf32> to vector<2x1024xf32>
    %27 = arith.divf %2, %26 : vector<2x1024xf32>
    %cst_10 = arith.constant 1.000000e+00 : f32
    %28 = vector.broadcast %cst_10 : f32 to vector<2x1024xf32>
    %29 = arith.minimumf %27, %28 : vector<2x1024xf32>
    %c0_11 = arith.constant 0 : index
    %c0_12 = arith.constant 0 : index
    %30 = vector.load %arg4[%c0_11, %c0_12] : memref<2x1024xf32, #tpu.memory_space<vmem>>, vector<2x1024xf32>
    tpu.vector_store %arg4[%c0_11, %c0_12], %29 {strides = array<i32>} : memref<2x1024xf32, #tpu.memory_space<vmem>>, vector<2x1024xf32>,
    %c0_13 = arith.constant 0 : index
    %c0_14 = arith.constant 0 : index
    %31 = vector.load %arg5[%c0_13, %c0_14] : memref<1x1xf32, #tpu.memory_space<vmem>>, vector<1x1xf32>
    tpu.vector_store %arg5[%c0_13, %c0_14], %22 {strides = array<i32>} : memref<1x1xf32, #tpu.memory_space<vmem>>, vector<1x1xf32>,
    return
  }
  func.func @transform_0(%arg0: i32) -> i32 {
    %c0_i32 = arith.constant 0 : i32
    %c0_i32_0 = arith.constant 0 : i32
    return %c0_i32 : i32
  }
  func.func @transform_1(%arg0: i32) -> i32 {
    %c0_i32 = arith.constant 0 : i32
    %c0_i32_0 = arith.constant 0 : i32
    return %c0_i32 : i32
  }
  func.func @transform_2(%arg0: i32) -> (i32, i32) {
    %c0_i32 = arith.constant 0 : i32
    %c0_i32_0 = arith.constant 0 : i32
    %c0_i32_1 = arith.constant 0 : i32
    return %c0_i32, %c0_i32_0 : i32, i32
  }
  func.func @transform_3(%arg0: i32) -> (i32, i32) {
    %c0_i32 = arith.constant 0 : i32
    %c0_i32_0 = arith.constant 0 : i32
    %c0_i32_1 = arith.constant 0 : i32
    return %c0_i32, %c0_i32_0 : i32, i32
  }
  func.func @transform_4(%arg0: i32) -> (i32, i32) {
    %c0_i32 = arith.constant 0 : i32
    %c0_i32_0 = arith.constant 0 : i32
    %c0_i32_1 = arith.constant 0 : i32
    return %c0_i32, %c0_i32_0 : i32, i32
  }
}

</mosaic_0001>

<bundles_post_ra>
// kernel: tpu_custom_call.1
= control target key start
LH: loop header
LB: loop body
LE: loop exit
PB: predicated region body
PF: predicated region fallthrough
CT: control target
= control target key end

     0   :  { %12 = vsyncpa [#allocation5], 0  ;;  %s327_s0 = inlined_call_operand.<no memory space> [shape: f32[1], index: 0, kind: input, shape index: {}]   ;;  %s328_s1 = inlined_call_operand.<no memory space> [shape: f32[1], index: 1, kind: input, shape index: {}]   ;;  %s329_s2 = inlined_call_operand.hbm [shape: f32[2,1024], index: 2, kind: input, shape index: {}]   ;;  %s330_s3 = inlined_call_operand.hbm [shape: f32[2,1024], index: 3, kind: output, shape index: {0}]   ;;  %s331_s4 = inlined_call_operand.hbm [shape: f32[1,1], index: 4, kind: output, shape index: {1}]  }
   0x1   :  { %13 = vsyncpa [#allocation6], 0 }
   0x2   :  { %14 = vsyncpa [#allocation9], 0  ;;  %s236_s15 = smov [#allocation4]   ;;  %s164_s19 = scalar_lea.hbm %s329_s2, 256 }
   0x3   :  { %s25_s16 = sshll.u32 %s236_s15, 4  ;;  %p165_p0 = scmp.ne.s32.totalorder %s329_s2, %s164_s19  ;;  %s26_s16 = int_to_ptr.vmem [resolvable:$true] %s25_s16 }
   0x4   :  { %p168_p1 = scmp.lt.u32.totalorder %s164_s19, %s329_s2 }
   0x6   :  { %p170_p2 = pnand %p168_p1, %p165_p0 }
   0x8   :  { %173 = shalt.err (!%p170_p2)
}
   0x9   :  { %s174_s24 = scalar_lea.vmem %s26_s16, 256  ;;  %p179_p4 = scmp.lt.s32.totalorder %s26_s16, %s26_s16 }
   0xa   :  { %p175_p3 = scmp.ne.s32.totalorder %s26_s16, %s174_s24  ;;  %p180_p5 = scmp.lt.s32.totalorder %s174_s24, %s174_s24 }
   0xc   :  { %p181_p6 = por %p180_p5, %p179_p4 }
   0xe   :  { %p182_p7 = pnand %p181_p6, %p175_p3 }
  0x10   :  { %185 = shalt.err (!%p182_p7)
}
  0x11   :  { %28 = dma.hbm_to_vmem [thread:$0]  %s329_s2, 256, %s26_s16, [#allocation5]  }
  0x12   :  { %230 = dma.done.wait [#allocation5], 256  }
  0x13   :  { %231 = vsyncadd [#allocation5], 4294967040  ;;  %v42_v0 = vlaneseq  ;;  %v237_v1 = vmov 1983009808   ;;  %v32_v6 = vld [vmem:[#allocation4] sm:$0xff]  ;;  %v33_v7 = vld [vmem:[#allocation4 + $0x8] sm:$0xff]  ;;  %v108_v42 = vstv %s327_s0  ;;  %v111_v46 = vstv %s328_s1 }
  0x14   :  { %v40_v2 = vunpack.c.l.s4 %v237_v1  ;;  %v277_v8 = vmax.f32 %v32_v6, 0.0  ;;  %v279_v9 = vmax.f32 %v33_v7, 0.0  ;;  %vm80_vm0 = vcmask 1041408   ;;  %s238_s29 = smov [#allocation8]  }
  0x15   :  { %v43_v3 = vshrl.u32 %v42_v0, 7  ;;  %v113_v43 = vmul.f32 0.9, %v108_v42  ;;  %s143_s30 = sshll.u32 %s238_s29, 4  ;;  %vm125_vm1 = vcmask 0   ;;  %s144_s30 = int_to_ptr.vmem [resolvable:$true] %s143_s30 }
  0x16   :  { %v41_v4 = vunpack.c.0.s8 %v40_v2  ;;  %v38_v10 = vcombine.high %v277_v8, %v277_v8  ;;  %v55_v12 = vcombine.high %v279_v9, %v279_v9  ;;  %s186_s7 = scalar_lea.vmem %s144_s30, 16  ;;  %s190_s8 = scalar_lea.vmem %s144_s30, 32 }
  0x17   :  { %p187_p8 = scmp.ne.s32.totalorder %s144_s30, %s186_s7  ;;  %p191_p9 = scmp.lt.s32.totalorder %s144_s30, %s144_s30 }
  0x18   :  { %v44_v5 = vsub.s32 %v41_v4, %v43_v3  ;;  %p192_p10 = scmp.lt.s32.totalorder %s190_s8, %s186_s7 }
  0x1a   :  { %v45_v11 = vrot.slane %v277_v8, %v44_v5  ;;  %v62_v13 = vrot.slane %v279_v9, %v44_v5  ;;  %v52_v14 = vrot.slane %v38_v10, %v44_v5  ;;  %v69_v16 = vrot.slane %v55_v12, %v44_v5  ;;  %p193_p11 = por %p192_p10, %p191_p9 }
  0x1c   :  { %v53_v15 = vcombine.high %v45_v11, %v45_v11  ;;  %v70_v17 = vcombine.high %v62_v13, %v62_v13  ;;  %v81_v18 = vsel %vm80_vm0, %v45_v11, -inf  ;;  %v85_v19 = vsel %vm80_vm0, %v62_v13, -inf  ;;  %p194_p12 = pnand %p193_p11, %p187_p8 }
  0x1d   :  { %v54_v20 = vcombine.high %v52_v14, %v52_v14  ;;  %v71_v21 = vcombine.high %v69_v16, %v69_v16  ;;  %v83_v23 = vsel %vm80_vm0, %v52_v14, -inf  ;;  %v86_v24 = vmax.f32 %v81_v18, %v85_v19 }
  0x1e   :  { %v82_v22 = vsel %vm80_vm0, %v53_v15, -inf  ;;  %v87_v25 = vsel %vm80_vm0, %v70_v17, -inf  ;;  %v89_v26 = vsel %vm80_vm0, %v69_v16, -inf }
  0x1f   :  { %v84_v27 = vsel %vm80_vm0, %v54_v20, -inf  ;;  %v88_v28 = vmax.f32 %v82_v22, %v87_v25  ;;  %v90_v29 = vmax.f32 %v83_v23, %v89_v26  ;;  %v91_v30 = vsel %vm80_vm0, %v71_v21, -inf }
  0x20   :  { %v92_v31 = vmax.f32 %v84_v27, %v91_v30 }
  0x21   :  { %v93_v32 = vmax.f32 %v86_v24, %v88_v28 }
  0x22   :  { %v94_v33 = vmax.f32 %v90_v29, %v92_v31 }
  0x24   :  { %v95_v34 = vmax.f32 %v93_v32, %v94_v33 }
  0x26   :  { %96 = vmax.xlane.f32.xlu0 %v95_v34 }
  0xb3   :  { %v97_v35 = vpop.xlane.xlu0 %96 }
  0xb4   :  { %v98_v36 = vrot.slane %v97_v35, 4 }
  0xb6   :  { %v99_v37 = vmax.f32 %v97_v35, %v98_v36 }
  0xb8   :  { %v100_v38 = vrot.slane %v99_v37, 2 }
  0xba   :  { %v101_v39 = vmax.f32 %v99_v37, %v100_v38 }
  0xbc   :  { %v102_v40 = vrot.slane %v101_v39, 1 }
  0xbe   :  { %v103_v41 = vmax.f32 %v101_v39, %v102_v40 }
  0xc0   :  { %156 = vpush %v103_v41 }
  0xf1   :  { %s157_s28 = spop %156 }
  0xf2   :  { %v105_v44 = vstv %s157_s28 }
  0xf3   :  { %v114_v45 = vmul.f32 0.1, %v105_v44 }
  0xf5   :  { %v115_v47 = vadd.f32 %v114_v45, %v113_v43 }
  0xf7   :  { %v116_v48 = vmul.f32 %v115_v47, %v111_v46  ;;  %126 = vst.msk [vmem:[#allocation8] sm:$0x1] %vm125_vm1, %v115_v47 }
  0xf8   :  { %197 = shalt.err (!%p194_p12)
}
  0xf9   :  { %s198_s10 = scalar_lea.hbm %s331_s4, 16 }
  0xfa   :  { %p199_p13 = scmp.ne.s32.totalorder %s331_s4, %s198_s10  ;;  %p202_p0 = scmp.lt.u32.totalorder %s198_s10, %s331_s4 }
  0xfc   :  { %p204_p1 = pnand %p202_p0, %p199_p13 }
  0xfe   :  { %207 = shalt.err (!%p204_p1)
}
  0xff   :  { %146 = dma.vmem_to_hbm [thread:$0]  %s144_s30, 16, %s331_s4, [#allocation9]   ;;  %v117_v49 = vadd.f32 1e-06, %v116_v48 }
 0x100   :  { %s239_s16 = smov [#allocation7]  }
 0x101   :  { %162 = vrcp.f32 %v117_v49  ;;  %s133_s17 = sshll.u32 %s239_s16, 4  ;;  %s134_s17 = int_to_ptr.vmem [resolvable:$true] %s133_s17 }
 0x102   :  { %s208_s18 = scalar_lea.vmem %s134_s17, 256  ;;  %p213_p3 = scmp.lt.s32.totalorder %s134_s17, %s134_s17 }
 0x103   :  { %p209_p2 = scmp.ne.s32.totalorder %s134_s17, %s208_s18  ;;  %p214_p4 = scmp.lt.s32.totalorder %s208_s18, %s208_s18 }
 0x105   :  { %p215_p5 = por %p214_p4, %p213_p3 }
 0x107   :  { %p216_p6 = pnand %p215_p5, %p209_p2 }
 0x10b   :  { %v163_v50 = vpop.eup %162 }
 0x10c   :  { %v119_v51 = vmul.f32 %v163_v50, %v277_v8  ;;  %v120_v52 = vmul.f32 %v163_v50, %v279_v9 }
 0x10e   :  { %v121_v53 = vmin.f32 %v119_v51, 1.0  ;;  %v122_v54 = vmin.f32 %v120_v52, 1.0 }
 0x110   :  { %123 = vst [vmem:[#allocation7] sm:$0xff] %v121_v53  ;;  %124 = vst [vmem:[#allocation7 + $0x8] sm:$0xff] %v122_v54 }
 0x111   :  { %219 = shalt.err (!%p216_p6)
}
 0x112   :  { %s220_s20 = scalar_lea.hbm %s330_s3, 256 }
 0x113   :  { %p221_p7 = scmp.ne.s32.totalorder %s330_s3, %s220_s20  ;;  %p224_p8 = scmp.lt.u32.totalorder %s220_s20, %s330_s3 }
 0x115   :  { %p226_p9 = pnand %p224_p8, %p221_p7 }
 0x117   :  { %229 = shalt.err (!%p226_p9)
}
 0x118   :  { %136 = dma.vmem_to_hbm [thread:$0]  %s134_s17, 256, %s330_s3, [#allocation6]  }
 0x119   :  { %232 = dma.done.wait [#allocation6], 256  }
 0x11a   :  { %233 = vsyncadd [#allocation6], 4294967040 }
 0x11b   :  { %234 = dma.done.wait [#allocation9], 16  }
 0x11c   :  { %235 = vsyncadd [#allocation9], 4294967280 }
 0x11d   :  { %153 = vsyncpa [#allocation5], 1 }
 0x11e   :  { %154 = vsyncpa [#allocation6], 1 }
 0x11f   :  { %155 = vsyncpa [#allocation9], 1 }

</bundles_post_ra>
